<compile_context>
chip_gen: v5e
topology: v5e:2x2
jax: 0.10.0
libtpu: 0.0.40
codegen_flags: <defaults>
</compile_context>

<pallas_src>
import functools

import jax
import jax.numpy as jnp
import numpy as np
from jax.experimental import pallas as pl
from jax.experimental.pallas import tpu as pltpu


def _single_tensorcore_chip() -> bool:
    """True on 1-TensorCore chips (v5e / v6e) -> collapse the batch grid."""
    try:
        kind = jax.devices()[0].device_kind.lower()
    except Exception:
        return True
    return any(tag in kind for tag in ("lite", "v5e", "v6"))


def _cross_attn_kernel(xd_ref, xres_ref, xe_ref, w_ref, bout_ref, out_ref, *,
                       c_dec, c_enc, batch_block, mxu_dtype):
    """One invocation processes `batch_block` batch elements (statically unrolled)."""
    le = xe_ref.shape[-1]

    w = w_ref[...]                        # (2*C_dec + C_enc + 1, C_enc) coalesced weights
    wa_g = w[0:c_dec]                     # gamma * channel_adjust^T      (C_dec, C_enc)
    wenc = w[c_dec:]                      # [wq@wk^T ; wv^T ; bq@wk^T]    (C_dec+C_enc+1, C_enc)
    bout = bout_ref[...]                  # gamma * (bv@wa + ba)          (C_dec, 1)

    for b in range(batch_block):          # static unroll; LLO interleaves the bodies
        xd = xd_ref[b]                    # (C_dec, HW)  patch-ordered decoder pixels (queries)
        xe = xe_ref[b]                    # (C_enc, Le)  encoder pixels (row-major)

        # One MXU matmul for every encoder-side projection (shared RHS = xe):
        #   rows [0, C_dec)            a  = (wq wk^T) @ xe   fused Q/K score weight
        #   rows [C_dec, C_dec+C_enc)  vt = wv^T @ xe        value projection (bv folded out)
        #   row  [C_dec+C_enc]         r  = (bq wk^T) @ xe   only score bias surviving softmax
        enc = jnp.dot(wenc, xe, preferred_element_type=jnp.float32)
        a = enc[0:c_dec]                  # (C_dec, Le)
        vt = enc[c_dec:c_dec + c_enc]     # (C_enc, Le)
        r = enc[c_dec + c_enc:]           # (1, Le)

        # Scores (HW, Le): contract the channel (sublane) dims of xd and a on the MXU.
        # bf16 operands, f32 accumulation.  (Perf-review note: this TN-form dot_general is
        # assumed to lower without a materialized transpose of xd -- verify on bundle dump.)
        s = jax.lax.dot_general(xd.astype(mxu_dtype), a.astype(mxu_dtype),
                                (((0,), (0,)), ((), ())),
                                preferred_element_type=jnp.float32) + r

        # Softmax numerator only; normalization deferred to the (much smaller) epilogue.
        m = jnp.max(s, axis=-1, keepdims=True)            # (HW, 1)
        p16 = jnp.exp(s - m).astype(mxu_dtype)            # (HW, Le) unnormalized

        # Context and denominator from ONE matmul: append a ones row to V^T so row C_enc of
        # the result is sum_k p[q, k], already lane-dense as (1, HW) -- no XLU transpose.
        vt1 = jnp.concatenate([vt, jnp.full((1, le), 1.0, jnp.float32)], axis=0)
        cf = jax.lax.dot_general(vt1.astype(mxu_dtype), p16,
                                 (((1,), (1,)), ((), ())),
                                 preferred_element_type=jnp.float32)
        ctx_t = cf[0:c_enc]               # (C_enc, HW) unnormalized context
        denom = cf[c_enc:c_enc + 1]       # (1, HW)     softmax denominators

        # channel_adjust (gamma pre-folded), deferred softmax scale, fused bias + residual.
        adj = jnp.dot(wa_g, ctx_t, preferred_element_type=jnp.float32)   # (C_dec, HW)
        out_ref[b] = (adj * pl.reciprocal(denom, approx=True) + bout + xres_ref[b])


def cross_attention_pallas(x_dec, x_enc, params, patch_size, mxu_dtype=jnp.bfloat16):
    """x_dec: (B, C_dec, H, W) NCHW; x_enc: (B, C_enc, He, We) NCHW (float32)."""
    B, C_dec, H, W = x_dec.shape
    _, C_enc, He, We = x_enc.shape
    P = patch_size
    assert H % P == 0 and W % P == 0
    HW, Le = H * W, He * We

    # Decoder pixels in torch-unfold patch order (query columns), channel-major.
    # TODO(synk): this fixed 256-lane permutation is the one remaining host-side copy; a
    # clean in-kernel equivalent would need a lane shuffle Mosaic does not express cheaply.
    xd_po = (x_dec.reshape(B, C_dec, H // P, P, W // P, P)
                  .transpose(0, 1, 2, 4, 3, 5)
                  .reshape(B, C_dec, HW))
    x_res = x_dec.reshape(B, C_dec, HW)           # free view: residual, fused in-kernel
    xe = x_enc.reshape(B, C_enc, Le)              # free view: encoder pixels

    wq, bq = params["wq"], params["bq"]           # (C_dec, Cq), (1, Cq)
    wk = params["wk"]                             # (C_enc, Cq)  (bk cancels in the softmax)
    wv, bv = params["wv"], params["bv"]           # (C_enc, C_enc), (1, C_enc)
    wa, ba = params["wa"], params["ba"]           # (C_enc, C_dec), (1, C_dec)
    gamma = params["gamma"][0, 0]

    # Tiny host-side weight fusions (stay runtime parameters; one small XLA fusion).
    w_qk = wq @ wk.T                              # (C_dec, C_enc) fused Q/K score weight
    w_kb = bq @ wk.T                              # (1, C_enc)     score-bias row
    wa_g = gamma * wa.T                           # (C_dec, C_enc) gamma folded into adjust
    w_all = jnp.concatenate([wa_g, w_qk, wv.T, w_kb], axis=0)   # (2*C_dec+C_enc+1, C_enc)
    b_out = (gamma * (bv @ wa + ba)).T            # (C_dec, 1)  bv folded via sum(attn)==1
    n_w = 2 * C_dec + C_enc + 1

    # Single-TC chips: one invocation, unrolled batch loop.  Multi-core chips: grid=(B,)
    # "parallel" so batch elements shard across TensorCores.
    bb = B if _single_tensorcore_chip() else 1
    grid = (B // bb,)

    kernel = functools.partial(_cross_attn_kernel, c_dec=C_dec, c_enc=C_enc,
                               batch_block=bb, mxu_dtype=mxu_dtype)

    y = pl.pallas_call(
        kernel,
        out_shape=jax.ShapeDtypeStruct((B, C_dec, HW), jnp.float32),
        grid_spec=pltpu.PrefetchScalarGridSpec(
            num_scalar_prefetch=0,
            grid=grid,
            in_specs=[
                pl.BlockSpec((bb, C_dec, HW), lambda g: (g, 0, 0)),   # queries (patch order)
                pl.BlockSpec((bb, C_dec, HW), lambda g: (g, 0, 0)),   # residual (row-major)
                pl.BlockSpec((bb, C_enc, Le), lambda g: (g, 0, 0)),   # encoder pixels
                pl.BlockSpec((n_w, C_enc), lambda g: (0, 0)),         # coalesced weights
                pl.BlockSpec((C_dec, 1), lambda g: (0, 0)),           # fused output bias
            ],
            out_specs=pl.BlockSpec((bb, C_dec, HW), lambda g: (g, 0, 0)),
        ),
        compiler_params=pltpu.CompilerParams(
            dimension_semantics=("parallel",)),
    )(xd_po, x_res, xe, w_all, b_out)

    # Residual and bias were added in-kernel; the kernel's columns are already the final
    # row-major pixels (the torch `out.view(B, C_enc, H, W)` quirk), so just reshape.
    return y.reshape(B, C_dec, H, W)


def cross_attention_reference(x_dec, x_enc, params, patch_size):
    """Pure-JAX reference mirroring the PyTorch forward literally (unfused)."""
    B, C_dec, H, W = x_dec.shape
    _, C_enc, He, We = x_enc.shape
    P = patch_size
    HW, Le = H * W, He * We

    xdec_po = (x_dec.reshape(B, C_dec, H // P, P, W // P, P)
                     .transpose(0, 2, 4, 3, 5, 1)
                     .reshape(B, HW, C_dec))
    xdec_rm = x_dec.transpose(0, 2, 3, 1).reshape(B, HW, C_dec)
    xenc = x_enc.transpose(0, 2, 3, 1).reshape(B, Le, C_enc)

    q = xdec_po @ params["wq"] + params["bq"]
    k = xenc @ params["wk"] + params["bk"]
    v = xenc @ params["wv"] + params["bv"]
    attn = jax.nn.softmax(jnp.einsum("bqc,bkc->bqk", q, k), axis=-1)
    ctx = jnp.einsum("bqk,bkc->bqc", attn, v)
    out2 = ctx @ params["wa"] + params["ba"]
    out_flat = params["gamma"][0, 0] * out2 + xdec_rm
    return out_flat.transpose(0, 2, 1).reshape(B, C_dec, H, W)


if __name__ == "__main__":
    # Small shapes consistent with the module.
    B, C_dec, C_enc = 2, 32, 16
    H = W = 16
    He = We = 16
    P = 8               # patch_size
    Cq = C_dec // 8     # 4

    key = jax.random.PRNGKey(0)
    ks = jax.random.split(key, 10)

    # 1x1 conv weights stored as (C_in, C_out) = transposed Conv2d weight.
    params = {
        "wq": 0.1 * jax.random.normal(ks[0], (C_dec, Cq), jnp.float32),
        "bq": 0.1 * jax.random.normal(ks[1], (1, Cq), jnp.float32),
        "wk": 0.1 * jax.random.normal(ks[2], (C_enc, Cq), jnp.float32),
        "bk": 0.1 * jax.random.normal(ks[3], (1, Cq), jnp.float32),
        "wv": 0.1 * jax.random.normal(ks[4], (C_enc, C_enc), jnp.float32),
        "bv": 0.1 * jax.random.normal(ks[5], (1, C_enc), jnp.float32),
        "wa": 0.1 * jax.random.normal(ks[6], (C_enc, C_dec), jnp.float32),
        "ba": 0.1 * jax.random.normal(ks[7], (1, C_dec), jnp.float32),
        # Module __init__ sets gamma = 0; use a nonzero value so the attention path
        # actually contributes (init value, not forward semantics).
        "gamma": jnp.full((1, 1), 0.25, jnp.float32),
    }

    x_dec = jax.random.normal(ks[8], (B, C_dec, H, W), jnp.float32)
    x_enc = jax.random.normal(ks[9], (B, C_enc, He, We), jnp.float32)

    run = jax.jit(functools.partial(cross_attention_pallas, patch_size=P))
    out = jax.block_until_ready(run(x_dec, x_enc, params))

    ref = cross_attention_reference(x_dec, x_enc, params, P)
    assert out.shape == (B, C_dec, H, W)
    # Tolerance relaxed for bf16 MXU operands + approx reciprocal (perf feedback).
    np.testing.assert_allclose(np.asarray(out), np.asarray(ref), rtol=2e-2, atol=2e-3)

    print("KERNEL_OK")
</pallas_src>

<mosaic_0001>
module attributes {stable_mosaic.version = 11 : i64} {
  func.func @_cross_attn_kernel(%arg0: i32, %arg1: memref<1x32x256xf32, #tpu.memory_space<vmem>>, %arg2: memref<1x32x256xf32, #tpu.memory_space<vmem>>, %arg3: memref<1x16x256xf32, #tpu.memory_space<vmem>>, %arg4: memref<81x16xf32, #tpu.memory_space<vmem>>, %arg5: memref<32x1xf32, #tpu.memory_space<vmem>>, %arg6: memref<1x32x256xf32, #tpu.memory_space<vmem>>) attributes {dimension_semantics = [#tpu.dimension_semantics<parallel>], iteration_bounds = array<i64: 2>, scalar_prefetch = 0 : i64, scratch_operands = 0 : i64, tpu.core_type = #tpu.core_type<tc>, window_params = [{transform_indices = @transform_0, window_bounds = array<i64: 1, 32, 256>}, {transform_indices = @transform_1, window_bounds = array<i64: 1, 32, 256>}, {transform_indices = @transform_2, window_bounds = array<i64: 1, 16, 256>}, {pipeline_mode = #tpu.pipeline_mode<synchronous>, transform_indices = @transform_3, window_bounds = array<i64: 81, 16>}, {pipeline_mode = #tpu.pipeline_mode<synchronous>, transform_indices = @transform_4, window_bounds = array<i64: 32, 1>}, {transform_indices = @transform_5, window_bounds = array<i64: 1, 32, 256>}]} {
    %c0 = arith.constant 0 : index
    %c0_0 = arith.constant 0 : index
    %0 = vector.load %arg4[%c0, %c0_0] : memref<81x16xf32, #tpu.memory_space<vmem>>, vector<81x16xf32>
    %1 = vector.extract_strided_slice %0 {offsets = [0, 0], sizes = [32, 16], strides = [1, 1]} : vector<81x16xf32> to vector<32x16xf32>
    %2 = vector.extract_strided_slice %0 {offsets = [32, 0], sizes = [49, 16], strides = [1, 1]} : vector<81x16xf32> to vector<49x16xf32>
    %c0_1 = arith.constant 0 : index
    %c0_2 = arith.constant 0 : index
    %3 = vector.load %arg5[%c0_1, %c0_2] : memref<32x1xf32, #tpu.memory_space<vmem>>, vector<32x1xf32>
    %c0_3 = arith.constant 0 : index
    %c0_4 = arith.constant 0 : index
    %c0_5 = arith.constant 0 : index
    %4 = vector.load %arg1[%c0_3, %c0_4, %c0_5] : memref<1x32x256xf32, #tpu.memory_space<vmem>>, vector<1x32x256xf32>
    %5 = vector.shape_cast %4 : vector<1x32x256xf32> to vector<32x256xf32>
    %c0_6 = arith.constant 0 : index
    %c0_7 = arith.constant 0 : index
    %c0_8 = arith.constant 0 : index
    %6 = vector.load %arg3[%c0_6, %c0_7, %c0_8] : memref<1x16x256xf32, #tpu.memory_space<vmem>>, vector<1x16x256xf32>
    %7 = vector.shape_cast %6 : vector<1x16x256xf32> to vector<16x256xf32>
    %cst = arith.constant dense<0.000000e+00> : vector<49x256xf32>
    %8 = tpu.matmul %2, %7, %cst {dimension_numbers = #tpu.dot_dimension_numbers<[1], [0], [0], [1], [0, 0, 1, 1], [], []>} : vector<49x16xf32>, vector<16x256xf32>, vector<49x256xf32> -> vector<49x256xf32>
    %9 = vector.extract_strided_slice %8 {offsets = [0, 0], sizes = [32, 256], strides = [1, 1]} : vector<49x256xf32> to vector<32x256xf32>
    %10 = vector.extract_strided_slice %8 {offsets = [32, 0], sizes = [16, 256], strides = [1, 1]} : vector<49x256xf32> to vector<16x256xf32>
    %11 = vector.extract_strided_slice %8 {offsets = [48, 0], sizes = [1, 256], strides = [1, 1]} : vector<49x256xf32> to vector<1x256xf32>
    %12 = arith.truncf %5 : vector<32x256xf32> to vector<32x256xbf16>
    %13 = arith.truncf %9 : vector<32x256xf32> to vector<32x256xbf16>
    %cst_9 = arith.constant dense<0.000000e+00> : vector<256x256xf32>
    %14 = tpu.matmul %12, %13, %cst_9 {dimension_numbers = #tpu.dot_dimension_numbers<[0], [0], [1], [1], [0, 1, 1, 1], [], []>} : vector<32x256xbf16>, vector<32x256xbf16>, vector<256x256xf32> -> vector<256x256xf32>
    %15 = vector.broadcast %11 : vector<1x256xf32> to vector<256x256xf32>
    %16 = arith.addf %14, %15 : vector<256x256xf32>
    %cst_10 = arith.constant dense<0xFF800000> : vector<256xf32>
    %17 = vector.multi_reduction <maximumf>, %16, %cst_10 [1] : vector<256x256xf32> to vector<256xf32>
    %18 = vector.shape_cast %17 : vector<256xf32> to vector<256x1xf32>
    %19 = vector.broadcast %18 : vector<256x1xf32> to vector<256x256xf32>
    %20 = arith.subf %16, %19 : vector<256x256xf32>
    %21 = math.exp %20 : vector<256x256xf32>
    %22 = arith.truncf %21 : vector<256x256xf32> to vector<256x256xbf16>
    %cst_11 = arith.constant 1.000000e+00 : f32
    %23 = vector.broadcast %cst_11 : f32 to vector<1x256xf32>
    %24 = tpu.concatenate %10, %23 in 0 : vector<16x256xf32>, vector<1x256xf32> -> vector<17x256xf32>
    %25 = arith.truncf %24 : vector<17x256xf32> to vector<17x256xbf16>
    %cst_12 = arith.constant dense<0.000000e+00> : vector<17x256xf32>
    %26 = tpu.matmul %25, %22, %cst_12 {dimension_numbers = #tpu.dot_dimension_numbers<[1], [1], [0], [0], [0, 0, 1, 0], [], []>} : vector<17x256xbf16>, vector<256x256xbf16>, vector<17x256xf32> -> vector<17x256xf32>
    %27 = vector.extract_strided_slice %26 {offsets = [0, 0], sizes = [16, 256], strides = [1, 1]} : vector<17x256xf32> to vector<16x256xf32>
    %28 = vector.extract_strided_slice %26 {offsets = [16, 0], sizes = [1, 256], strides = [1, 1]} : vector<17x256xf32> to vector<1x256xf32>
    %cst_13 = arith.constant dense<0.000000e+00> : vector<32x256xf32>
    %29 = tpu.matmul %1, %27, %cst_13 {dimension_numbers = #tpu.dot_dimension_numbers<[1], [0], [0], [1], [0, 0, 1, 1], [], []>} : vector<32x16xf32>, vector<16x256xf32>, vector<32x256xf32> -> vector<32x256xf32>
    %30 = tpu.reciprocal %28 {approx = true} : vector<1x256xf32> -> vector<1x256xf32>
    %31 = vector.broadcast %30 : vector<1x256xf32> to vector<32x256xf32>
    %32 = arith.mulf %29, %31 : vector<32x256xf32>
    %33 = vector.broadcast %3 : vector<32x1xf32> to vector<32x256xf32>
    %34 = arith.addf %32, %33 : vector<32x256xf32>
    %c0_14 = arith.constant 0 : index
    %c0_15 = arith.constant 0 : index
    %c0_16 = arith.constant 0 : index
    %35 = vector.load %arg2[%c0_14, %c0_15, %c0_16] : memref<1x32x256xf32, #tpu.memory_space<vmem>>, vector<1x32x256xf32>
    %36 = vector.shape_cast %35 : vector<1x32x256xf32> to vector<32x256xf32>
    %37 = arith.addf %34, %36 : vector<32x256xf32>
    %c0_17 = arith.constant 0 : index
    %c0_18 = arith.constant 0 : index
    %c0_19 = arith.constant 0 : index
    %38 = vector.load %arg6[%c0_17, %c0_18, %c0_19] : memref<1x32x256xf32, #tpu.memory_space<vmem>>, vector<1x32x256xf32>
    %39 = vector.shape_cast %38 : vector<1x32x256xf32> to vector<32x256xf32>
    %40 = vector.shape_cast %37 : vector<32x256xf32> to vector<1x32x256xf32>
    tpu.vector_store %arg6[%c0_17, %c0_18, %c0_19], %40 {strides = array<i32>} : memref<1x32x256xf32, #tpu.memory_space<vmem>>, vector<1x32x256xf32>,
    return
  }
  func.func @transform_0(%arg0: i32) -> (i32, i32, i32) {
    %c0_i32 = arith.constant 0 : i32
    %c0_i32_0 = arith.constant 0 : i32
    %c0_i32_1 = arith.constant 0 : i32
    return %arg0, %c0_i32, %c0_i32_0 : i32, i32, i32
  }
  func.func @transform_1(%arg0: i32) -> (i32, i32, i32) {
    %c0_i32 = arith.constant 0 : i32
    %c0_i32_0 = arith.constant 0 : i32
    %c0_i32_1 = arith.constant 0 : i32
    return %arg0, %c0_i32, %c0_i32_0 : i32, i32, i32
  }
  func.func @transform_2(%arg0: i32) -> (i32, i32, i32) {
    %c0_i32 = arith.constant 0 : i32
    %c0_i32_0 = arith.constant 0 : i32
    %c0_i32_1 = arith.constant 0 : i32
    return %arg0, %c0_i32, %c0_i32_0 : i32, i32, i32
  }
  func.func @transform_3(%arg0: i32) -> (i32, i32) {
    %c0_i32 = arith.constant 0 : i32
    %c0_i32_0 = arith.constant 0 : i32
    %c0_i32_1 = arith.constant 0 : i32
    return %c0_i32, %c0_i32_0 : i32, i32
  }
  func.func @transform_4(%arg0: i32) -> (i32, i32) {
    %c0_i32 = arith.constant 0 : i32
    %c0_i32_0 = arith.constant 0 : i32
    %c0_i32_1 = arith.constant 0 : i32
    return %c0_i32, %c0_i32_0 : i32, i32
  }
  func.func @transform_5(%arg0: i32) -> (i32, i32, i32) {
    %c0_i32 = arith.constant 0 : i32
    %c0_i32_0 = arith.constant 0 : i32
    %c0_i32_1 = arith.constant 0 : i32
    return %arg0, %c0_i32, %c0_i32_0 : i32, i32, i32
  }
}

</mosaic_0001>

<bundles_post_ra>
// kernel: cross_attention_pallas.1
= control target key start
LH: loop header
LB: loop body
LE: loop exit
PB: predicated region body
PF: predicated region fallthrough
CT: control target
= control target key end

     0   :  { %s1518_s18 = smov 0   ;;  %s2133_s0 = inlined_call_operand.vmem [shape: f32[2,32,256], index: 0, kind: input, shape index: {}]   ;;  %s2134_s1 = inlined_call_operand.vmem [shape: f32[2,32,256], index: 1, kind: input, shape index: {}]   ;;  %s2135_s2 = inlined_call_operand.vmem [shape: f32[2,16,256], index: 2, kind: input, shape index: {}]   ;;  %s2136_s3 = inlined_call_operand.vmem [shape: f32[81,16], index: 3, kind: input, shape index: {}]   ;;  %s2137_s4 = inlined_call_operand.vmem [shape: f32[32,1], index: 4, kind: input, shape index: {}]   ;;  %s2138_s5 = inlined_call_operand.vmem [shape: f32[2,32,256], index: 5, kind: output, shape index: {}]  }
   0x1 LB: > { %s1260_s19 = sadd.s32 4294967295, %s1484_s18   ;;  %p1264_p0 = scmp.ge.s32.totalorder %s1484_s18, 1  ;;  %s1484_s18 = sphi %s1518_s18, %s15_s18  }
   0x2   : > { %p207_p1 = scmp.lt.s32.totalorder %s1484_s18, 3 }
   0x4   : > { %p208_p2 = pnand %p1264_p0, %p207_p1 }
   0x6   : > { %211 = sbr.rel (%p208_p2) target bundleno = 1092 (0x444), region = 40 }
   0xb   : > { %p245_p3 = scmp.lt.s32.totalorder %s1260_s19, 1  ;;  %v270_v10 = vld [vmem:[%s2136_s3 + $0x20] sm:$0xff]  ;;  %vm293_vm0 = vcmask 130048   ;;  %v271_v11 = vld [vmem:[%s2136_s3 + $0x28] sm:$0xff]  ;;  %v272_v18 = vld [vmem:[%s2136_s3 + $0x30] sm:$0xff]  ;;  %vm425_vm1 = vcmask 261120  }
   0xc   : > { %v273_v19 = vld [vmem:[%s2136_s3 + $0x38] sm:$0xff]  ;;  %v274_v20 = vld [vmem:[%s2136_s3 + $0x40] sm:$0xff]  ;;  %v275_v23 = vld [vmem:[%s2136_s3 + $0x48] sm:$0xff] }
   0xd   : > { %s2188_s19 = smov (!%p245_p3, %s1260_s19), 1  ;;  %v276_v26 = vld [vmem:[%s2136_s3 + $0x50] sm:$0x1] }
   0xe   : > { %s1526_s20 = sshll.u32 %s2188_s19, 6  ;;  %s1331_s21 = sshll.u32 %s2188_s19, 5 }
   0xf   : > { %s249_s24 = scalar_lea.vmem %s2133_s0, %s1526_s20  ;;  %s259_s27 = scalar_lea.vmem %s2135_s2, %s1331_s21 }
  0x10   : > { %v281_v0 = vld [vmem:[%s249_s24] sm:$0xff]  ;;  %v282_v1 = vld [vmem:[%s249_s24 + $0x8] sm:$0xff]  ;;  %v283_v2 = vld [vmem:[%s249_s24 + $0x10] sm:$0xff]  ;;  %s2106_s12 = scalar_lea.vmem %s2134_s1, %s1526_s20  ;;  %s2113_s15 = scalar_lea.vmem %s2138_s5, %s1526_s20 }
  0x11   : > { %v291_v3 = vld [vmem:[%s259_s27 + $0x10] sm:$0xff]  ;;  %v292_v4 = vld [vmem:[%s259_s27 + $0x18] sm:$0xff]  ;;  %v289_v5 = vld [vmem:[%s259_s27] sm:$0xff]  ;;  %v391_v6 = vpack.c.bf16 %v283_v2, %v281_v0 }
  0x12   : > { %329 = vmatpush.msra.mxu0 %v291_v3  ;;  %367 = vmatpush.msra.mxu1 %v292_v4  ;;  %v290_v7 = vld [vmem:[%s259_s27 + $0x8] sm:$0xff]  ;;  %v284_v8 = vld [vmem:[%s249_s24 + $0x18] sm:$0xff]  ;;  %v285_v12 = vld [vmem:[%s249_s24 + $0x20] sm:$0xff] }
  0x13   : > { %v392_v9 = vpack.c.bf16 %v284_v8, %v282_v1  ;;  %v286_v13 = vld [vmem:[%s249_s24 + $0x28] sm:$0xff]  ;;  %v287_v14 = vld [vmem:[%s249_s24 + $0x30] sm:$0xff]  ;;  %v288_v15 = vld [vmem:[%s249_s24 + $0x38] sm:$0xff] }
  0x14   : > { %330 = vmatpush.msra.mxu0 %v289_v5  ;;  %368 = vmatpush.msra.mxu1 %v290_v7  ;;  %v393_v16 = vpack.c.bf16 %v287_v14, %v285_v12  ;;  %v394_v17 = vpack.c.bf16 %v288_v15, %v286_v13 }
  0x15   : > { %401 = vxpose.binary.xlu0.c.b16.start [1/4] (short) %v392_v9, %v391_v6, 128 }
  0x16   : > { %1273 = vmatmul.msk.f32.vlgmr.msra.gmra.mxu0 %vm293_vm0, %v270_v10  ;;  %1280 = vmatmul.msk.f32.vlgmr.msra.gmra.mxu1 %vm293_vm0, %v270_v10 }
  0x1e   : > { %1274 = vmatmul.msk.f32.gmra.mxu0 %vm293_vm0, %v271_v11  ;;  %1281 = vmatmul.msk.f32.gmra.mxu1 %vm293_vm0, %v271_v11 }
  0x25   : > { %402 = vxpose.binary.xlu0.c.b16.end [2/4] (short) %v394_v17, %v393_v16, 128 }
  0x26   : > { %1275 = vmatmul.msk.f32.gmra.mxu0 %vm293_vm0, %v272_v18  ;;  %1282 = vmatmul.msk.f32.gmra.mxu1 %vm293_vm0, %v272_v18 }
  0x2e   : > { %1276 = vmatmul.msk.f32.gmra.mxu0 %vm293_vm0, %v273_v19  ;;  %1283 = vmatmul.msk.f32.gmra.mxu1 %vm293_vm0, %v273_v19 }
  0x36   : > { %1277 = vmatmul.msk.f32.gmra.mxu0 %vm293_vm0, %v274_v20  ;;  %1284 = vmatmul.msk.f32.gmra.mxu1 %vm293_vm0, %v274_v20 }
  0x3e   : > { %1278 = vmatmul.msk.f32.gmra.mxu0 %vm293_vm0, %v275_v23  ;;  %1285 = vmatmul.msk.f32.gmra.mxu1 %vm293_vm0, %v275_v23 }
  0x46   : > { %1279 = vmatmul.msk.f32.gmra.mxu0 %vm293_vm0, %v276_v26  ;;  %1286 = vmatmul.msk.f32.gmra.mxu1 %vm293_vm0, %v276_v26 }
  0x93   : > { %v332_v21 = vpop.f32.mrf.mxu0  ;;  %v370_v22 = vpop.f32.mrf.mxu1 }
  0x9b   : > { %v335_v24 = vpop.f32.mrf.mxu0  ;;  %v373_v25 = vpop.f32.mrf.mxu1 }
  0x9c   : > { %v395_v33 = vpack.c.bf16 %v335_v24, %v332_v21  ;;  %v396_v34 = vpack.c.bf16 %v373_v25, %v370_v22 }
  0xa3   : > { %v338_v27 = vpop.f32.mrf.mxu0  ;;  %v376_v28 = vpop.f32.mrf.mxu1 }
  0xab   : > { %v341_v29 = vpop.f32.mrf.mxu0  ;;  %v379_v30 = vpop.f32.mrf.mxu1 }
  0xac   : > { %v397_v31 = vpack.c.bf16 %v341_v29, %v338_v27  ;;  %v398_v32 = vpack.c.bf16 %v379_v30, %v376_v28 }
  0xae   : > { %480 = vmatpush.bf16.msra.mxu2 %v397_v31  ;;  %569 = vmatpush.bf16.msra.mxu3 %v398_v32 }
  0xb2   : > { %481 = vmatpush.bf16.msra.mxu2 %v395_v33  ;;  %570 = vmatpush.bf16.msra.mxu3 %v396_v34 }
  0xb3   : > { %v344_v46 = vpop.f32.mrf.mxu0  ;;  %v382_v47 = vpop.f32.mrf.mxu1 }
  0xbb   : > { %v347_v49 = vpop.f32.mrf.mxu0  ;;  %v385_v50 = vpop.f32.mrf.mxu1 }
  0xbc   : > { %v1584_v51 = vpack.c.bf16 %v347_v49, %v344_v46  ;;  %v1586_v52 = vpack.c.bf16 %v385_v50, %v382_v47 }
  0xbe   : > { %2147 = vst [vmem:[#allocation2_spill] sm:$0xff] %v1584_v51 }
  0xbf   : > { %2148 = vst [vmem:[#allocation3_spill] sm:$0xff] %v1586_v52 }
  0xc1   : > { %v409_v35 = vpop.trf.xlu0 }
  0xc2   : > { %1287 = vmatmul.msk.bf16.vlgmr.msra.gmra.mxu2 %vm425_vm1, %v409_v35  ;;  %1303 = vmatmul.msk.bf16.vlgmr.msra.gmra.mxu3 %vm425_vm1, %v409_v35 }
  0xc3   : > { %v350_v4 = vpop.f32.mrf.mxu0  ;;  %v388_v5 = vpop.f32.mrf.mxu1 }
  0xc4   : > { %v1622_v6 = vperm.slane %v350_v4, 0  ;;  %v1624_v7 = vperm.slane %v388_v5, 0 }
  0xc9   : > { %v410_v36 = vpop.trf.xlu0 }
  0xd1   : > { %v411_v37 = vpop.trf.xlu0 }
  0xd2   : > { %1288 = vmatmul.msk.bf16.gmra.mxu2 %vm425_vm1, %v411_v37  ;;  %1304 = vmatmul.msk.bf16.gmra.mxu3 %vm425_vm1, %v411_v37 }
  0xd9   : > { %v412_v38 = vpop.trf.xlu0 }
  0xe1   : > { %v413_v39 = vpop.trf.xlu0 }
  0xe2   : > { %1289 = vmatmul.msk.bf16.gmra.mxu2 %vm425_vm1, %v413_v39  ;;  %1305 = vmatmul.msk.bf16.gmra.mxu3 %vm425_vm1, %v413_v39 }
  0xe9   : > { %v414_v40 = vpop.trf.xlu0 }
  0xf1   : > { %v415_v41 = vpop.trf.xlu0 }
  0xf2   : > { %1290 = vmatmul.msk.bf16.gmra.mxu2 %vm425_vm1, %v415_v41  ;;  %1306 = vmatmul.msk.bf16.gmra.mxu3 %vm425_vm1, %v415_v41 }
  0xf9   : > { %v416_v42 = vpop.trf.xlu0 }
 0x101   : > { %v417_v43 = vpop.trf.xlu0 }
 0x102   : > { %1291 = vmatmul.msk.bf16.gmra.mxu2 %vm425_vm1, %v417_v43  ;;  %1307 = vmatmul.msk.bf16.gmra.mxu3 %vm425_vm1, %v417_v43 }
 0x109   : > { %v418_v44 = vpop.trf.xlu0 }
 0x111   : > { %v419_v45 = vpop.trf.xlu0 }
 0x112   : > { %1292 = vmatmul.msk.bf16.gmra.mxu2 %vm425_vm1, %v419_v45  ;;  %1308 = vmatmul.msk.bf16.gmra.mxu3 %vm425_vm1, %v419_v45 }
 0x119   : > { %v1582_v48 = vpop.trf.xlu0 }
 0x121   : > { %v421_v53 = vpop.trf.xlu0 }
 0x122   : > { %1293 = vmatmul.msk.bf16.gmra.mxu2 %vm425_vm1, %v421_v53  ;;  %1309 = vmatmul.msk.bf16.gmra.mxu3 %vm425_vm1, %v421_v53 }
 0x129   : > { %v1590_v54 = vpop.trf.xlu0 }
 0x131   : > { %v423_v55 = vpop.trf.xlu0 }
 0x132   : > { %1294 = vmatmul.msk.bf16.gmra.mxu2 %vm425_vm1, %v423_v55  ;;  %1310 = vmatmul.msk.bf16.gmra.mxu3 %vm425_vm1, %v423_v55 }
 0x139   : > { %v424_v50 = vpop.trf.xlu0 }
 0x142   : > { %1295 = vmatmul.msk.bf16.gmra.mxu2 %vm425_vm1, %v410_v36  ;;  %1311 = vmatmul.msk.bf16.gmra.mxu3 %vm425_vm1, %v410_v36 }
 0x145   : > { %v1596_v56 = vpop.f32.mrf.mxu2  ;;  %v1598_v57 = vpop.f32.mrf.mxu3 }
 0x14d   : > { %v1600_v58 = vpop.f32.mrf.mxu2  ;;  %v1602_v59 = vpop.f32.mrf.mxu3 }
 0x152   : > { %1296 = vmatmul.msk.bf16.gmra.mxu2 %vm425_vm1, %v412_v38  ;;  %1312 = vmatmul.msk.bf16.gmra.mxu3 %vm425_vm1, %v412_v38 }
 0x155   : > { %v1606_v60 = vpop.f32.mrf.mxu2  ;;  %v1608_v61 = vpop.f32.mrf.mxu3 }
 0x156   : > { %v1716_v55 = vadd.f32 %v1608_v61, %v1624_v7 }
 0x158   : > { %2150 = vst [vmem:[#allocation5_spill] sm:$0xff] %v1716_v55 }
 0x15d   : > { %v1610_v62 = vpop.f32.mrf.mxu2  ;;  %v1612_v63 = vpop.f32.mrf.mxu3 }
 0x162   : > { %1297 = vmatmul.msk.bf16.gmra.mxu2 %vm425_vm1, %v414_v40  ;;  %1313 = vmatmul.msk.bf16.gmra.mxu3 %vm425_vm1, %v414_v40 }
 0x165   : > { %v493_v0 = vpop.f32.mrf.mxu2  ;;  %v582_v1 = vpop.f32.mrf.mxu3 }
 0x166   : > { %v1635_v13 = vadd.f32 %v493_v0, %v1622_v6  ;;  %v1638_v14 = vadd.f32 %v582_v1, %v1624_v7 }
 0x168   : > { %v664_v20 = vmax.f32 %v1635_v13, %v1638_v14 }
 0x16d   : > { %v1616_v2 = vpop.f32.mrf.mxu2  ;;  %v1618_v3 = vpop.f32.mrf.mxu3 }
 0x172   : > { %1298 = vmatmul.msk.bf16.gmra.mxu2 %vm425_vm1, %v416_v42  ;;  %1314 = vmatmul.msk.bf16.gmra.mxu3 %vm425_vm1, %v416_v42 }
 0x175   : > { %v498_v8 = vpop.f32.mrf.mxu2  ;;  %v587_v9 = vpop.f32.mrf.mxu3 }
 0x176   : > { %v1627_v10 = vadd.f32 %v498_v8, %v1622_v6  ;;  %v1630_v11 = vadd.f32 %v587_v9, %v1624_v7 }
 0x178   : > { %v670_v12 = vmax.f32 %v1627_v10, %v1630_v11 }
 0x17a   : > { %671 = vmax.xlane.f32.xlu2 %v670_v12 }
 0x17d   : > { %v500_v15 = vpop.f32.mrf.mxu2  ;;  %v589_v16 = vpop.f32.mrf.mxu3 }
 0x17e   : > { %v1641_v17 = vadd.f32 %v500_v15, %v1622_v6  ;;  %v1644_v18 = vadd.f32 %v589_v16, %v1624_v7 }
 0x180   : > { %v673_v19 = vmax.f32 %v1641_v17, %v1644_v18 }
 0x182   : > { %674 = vmax.xlane.f32.xlu1 %v673_v19  ;;  %665 = vmax.xlane.f32.xlu2 %v664_v20  ;;  %v1738_v19 = vadd.f32 %v1616_v2, %v1622_v6  ;;  %v1742_v20 = vadd.f32 %v1618_v3, %v1624_v7  ;;  %v1756_v2 = vadd.f32 %v1612_v63, %v1624_v7 }
 0x183   : > { %1299 = vmatmul.msk.bf16.gmra.mxu2 %vm425_vm1, %v418_v44  ;;  %1315 = vmatmul.msk.bf16.gmra.mxu3 %vm425_vm1, %v418_v44 }
 0x184   : > { %2154 = vst [vmem:[#allocation9_spill] sm:$0xff] %v1756_v2 }
 0x185   : > { %v503_v21 = vpop.f32.mrf.mxu2  ;;  %v592_v22 = vpop.f32.mrf.mxu3 }
 0x186   : > { %v1653_v23 = vadd.f32 %v503_v21, %v1622_v6  ;;  %v1656_v24 = vadd.f32 %v592_v22, %v1624_v7 }
 0x188   : > { %v676_v25 = vmax.f32 %v1653_v23, %v1656_v24 }
 0x18a   : > { %677 = vmax.xlane.f32.xlu0 %v676_v25  ;;  %v667_v25 = vmax.f32 %v1738_v19, %v1742_v20 }
 0x18d   : > { %v505_v26 = vpop.f32.mrf.mxu2  ;;  %v594_v27 = vpop.f32.mrf.mxu3 }
 0x18e   : > { %v1661_v28 = vadd.f32 %v505_v26, %v1622_v6  ;;  %v1664_v29 = vadd.f32 %v594_v27, %v1624_v7  ;;  %v1752_v26 = vadd.f32 %v1610_v62, %v1622_v6 }
 0x190   : > { %v679_v30 = vmax.f32 %v1661_v28, %v1664_v29  ;;  %2153 = vst [vmem:[#allocation8_spill] sm:$0xff] %v1752_v26 }
 0x192   : > { %680 = vmax.xlane.f32.xlu1 %v679_v30  ;;  %v661_v30 = vmax.f32 %v1752_v26, %v1756_v2 }
 0x193   : > { %1300 = vmatmul.msk.bf16.gmra.mxu2 %vm425_vm1, %v1582_v48  ;;  %1316 = vmatmul.msk.bf16.gmra.mxu3 %vm425_vm1, %v1582_v48 }
 0x195   : > { %v508_v31 = vpop.f32.mrf.mxu2  ;;  %v597_v32 = vpop.f32.mrf.mxu3 }
 0x196   : > { %v1673_v33 = vadd.f32 %v508_v31, %v1622_v6  ;;  %v1676_v34 = vadd.f32 %v597_v32, %v1624_v7 }
 0x198   : > { %v682_v35 = vmax.f32 %v1673_v33, %v1676_v34 }
 0x19a   : > { %683 = vmax.xlane.f32.xlu1 %v682_v35 }
 0x19d   : > { %v510_v36 = vpop.f32.mrf.mxu2  ;;  %v599_v37 = vpop.f32.mrf.mxu3 }
 0x19e   : > { %v1681_v38 = vadd.f32 %v510_v36, %v1622_v6  ;;  %v1684_v39 = vadd.f32 %v599_v37, %v1624_v7 }
 0x1a0   : > { %v685_v40 = vmax.f32 %v1681_v38, %v1684_v39 }
 0x1a2   : > { %686 = vmax.xlane.f32.xlu2 %v685_v40 }
 0x1a3   : > { %1301 = vmatmul.msk.bf16.gmra.mxu2 %vm425_vm1, %v1590_v54  ;;  %1317 = vmatmul.msk.bf16.gmra.mxu3 %vm425_vm1, %v1590_v54  ;;  %v1712_v54 = vadd.f32 %v1606_v60, %v1622_v6 }
 0x1a5   : > { %v513_v41 = vpop.f32.mrf.mxu2  ;;  %v602_v42 = vpop.f32.mrf.mxu3  ;;  %2149 = vst [vmem:[#allocation4_spill] sm:$0xff] %v1712_v54  ;;  %v658_v8 = vmax.f32 %v1712_v54, %v1716_v55 }
 0x1a6   : > { %v1693_v43 = vadd.f32 %v513_v41, %v1622_v6  ;;  %v1696_v44 = vadd.f32 %v602_v42, %v1624_v7 }
 0x1a8   : > { %v688_v45 = vmax.f32 %v1693_v43, %v1696_v44 }
 0x1aa   : > { %689 = vmax.xlane.f32.xlu2 %v688_v45 }
 0x1ad   : > { %v515_v46 = vpop.f32.mrf.mxu2  ;;  %v604_v47 = vpop.f32.mrf.mxu3 }
 0x1ae   : > { %v1701_v48 = vadd.f32 %v515_v46, %v1622_v6  ;;  %v1704_v49 = vadd.f32 %v604_v47, %v1624_v7 }
 0x1b0   : > { %v691_v53 = vmax.f32 %v1701_v48, %v1704_v49 }
 0x1b2   : > { %692 = vmax.xlane.f32.xlu2 %v691_v53 }
 0x1b3   : > { %1302 = vmatmul.msk.bf16.gmra.mxu2 %vm425_vm1, %v424_v50  ;;  %1318 = vmatmul.msk.bf16.gmra.mxu3 %vm425_vm1, %v424_v50 }
 0x1b5   : > { %v518_v0 = vpop.f32.mrf.mxu2  ;;  %v607_v1 = vpop.f32.mrf.mxu3 }
 0x1b6   : > { %v1719_v4 = vadd.f32 %v518_v0, %v1622_v6  ;;  %v1722_v5 = vadd.f32 %v607_v1, %v1624_v7 }
 0x1b8   : > { %v694_v9 = vmax.f32 %v1719_v4, %v1722_v5 }
 0x1ba   : > { %659 = vmax.xlane.f32.xlu2 %v658_v8  ;;  %695 = vmax.xlane.f32.xlu1 %v694_v9 }
 0x1bd   : > { %v520_v60 = vpop.f32.mrf.mxu2  ;;  %v609_v12 = vpop.f32.mrf.mxu3 }
 0x1be   : > { %v1729_v61 = vadd.f32 %v520_v60, %v1622_v6  ;;  %v1732_v15 = vadd.f32 %v609_v12, %v1624_v7 }
 0x1c0   : > { %v697_v16 = vmax.f32 %v1729_v61, %v1732_v15 }
 0x1c2   : > { %698 = vmax.xlane.f32.xlu1 %v697_v16 }
 0x1c5   : > { %v1744_v21 = vpop.f32.mrf.mxu2  ;;  %v1746_v22 = vpop.f32.mrf.mxu3 }
 0x1c6   : > { %2151 = vst [vmem:[#allocation6_spill] sm:$0xff] %v1744_v21 }
 0x1c7   : > { %2152 = vst [vmem:[#allocation7_spill] sm:$0xff] %v1746_v22 }
 0x1ca   : > { %668 = vmax.xlane.f32.xlu1 %v667_v25 }
 0x1cd   : > { %v1758_v27 = vpop.f32.mrf.mxu2  ;;  %v1760_v3 = vpop.f32.mrf.mxu3 }
 0x1ce   : > { %2155 = vst [vmem:[#allocation10_spill] sm:$0xff] %v1758_v27 }
 0x1cf   : > { %2156 = vst [vmem:[#allocation11_spill] sm:$0xff] %v1760_v3 }
 0x1d2   : > { %662 = vmax.xlane.f32.xlu1 %v661_v30 }
 0x1d5   : > { %v1764_v31 = vpop.f32.mrf.mxu2  ;;  %v1766_v32 = vpop.f32.mrf.mxu3 }
 0x1d6   : > { %2157 = vst [vmem:[#allocation12_spill] sm:$0xff] %v1764_v31 }
 0x1d7   : > { %2158 = vst [vmem:[#allocation13_spill] sm:$0xff] %v1766_v32 }
 0x1dd   : > { %v1768_v35 = vpop.f32.mrf.mxu2  ;;  %v1770_v62 = vpop.f32.mrf.mxu3 }
 0x1de   : > { %2159 = vst [vmem:[#allocation14_spill] sm:$0xff] %v1768_v35 }
 0x1df   : > { %2160 = vst [vmem:[#allocation15_spill] sm:$0xff] %v1770_v62 }
 0x1e5   : > { %v1772_v36 = vpop.f32.mrf.mxu2  ;;  %v1774_v63 = vpop.f32.mrf.mxu3 }
 0x1ed   : > { %v1776_v37 = vpop.f32.mrf.mxu2  ;;  %v1778_v40 = vpop.f32.mrf.mxu3 }
 0x1ee   : > { %2161 = vst [vmem:[#allocation16_spill] sm:$0xff] %v1776_v37  ;;  %v1796_v1 = vpop.xlane.xlu2 %671 }
 0x1ef   : > { %2162 = vst [vmem:[#allocation17_spill] sm:$0xff] %v1778_v40 }
 0x1f5   : > { %v1780_v41 = vpop.f32.mrf.mxu2  ;;  %v1782_v42 = vpop.f32.mrf.mxu3 }
 0x1f6   : > { %v1798_v8 = vpop.xlane.xlu1 %674  ;;  %v1800_v12 = vpop.xlane.xlu2 %665 }
 0x1fd   : > { %v1784_v45 = vpop.f32.mrf.mxu2  ;;  %v1786_v46 = vpop.f32.mrf.mxu3 }
 0x1fe   : > { %2163 = vst [vmem:[#allocation18_spill] sm:$0xff] %v1784_v45 }
 0x1ff   : > { %2164 = vst [vmem:[#allocation19_spill] sm:$0xff] %v1786_v46 }
 0x205   : > { %v1802_v16 = vpop.xlane.xlu1 %680 }
 0x206   : > { %v1788_v47 = vpop.f32.mrf.mxu2  ;;  %v1790_v50 = vpop.f32.mrf.mxu3 }
 0x20d   : > { %v1810_v51 = vpop.xlane.xlu1 %683 }
 0x20e   : > { %v1792_v53 = vpop.f32.mrf.mxu2  ;;  %v1794_v0 = vpop.f32.mrf.mxu3 }
 0x215   : > { %v1808_v52 = vpop.xlane.xlu2 %686 }
 0x216   : > { %v548_v9 = vpop.f32.mrf.mxu2  ;;  %v637_v60 = vpop.f32.mrf.mxu3 }
 0x21d   : > { %v690_v21 = vpop.xlane.xlu2 %689 }
 0x21e   : > { %v1804_v25 = vpop.f32.mrf.mxu2  ;;  %v1806_v30 = vpop.f32.mrf.mxu3 }
 0x226   : > { %v553_v3 = vpop.f32.mrf.mxu2  ;;  %v642_v27 = vpop.f32.mrf.mxu3 }
 0x227   : > { %v1813_v62 = vadd.f32 %v553_v3, %v1622_v6  ;;  %v1816_v35 = vadd.f32 %v642_v27, %v1624_v7 }
 0x229   : > { %2165 = vst [vmem:[#allocation20_spill] sm:$0xff] %v1813_v62  ;;  %v736_v22 = vmax.f32 %v1813_v62, %v1816_v35  ;;  %v693_v62 = vpop.xlane.xlu2 %692 }
 0x22a   : > { %2166 = vst [vmem:[#allocation21_spill] sm:$0xff] %v1816_v35 }
 0x22b   : > { %737 = vmax.xlane.f32.xlu2 %v736_v22 }
 0x22d   : > { %v696_v40 = vpop.xlane.xlu1 %695 }
 0x22e   : > { %v555_v37 = vpop.f32.mrf.mxu2  ;;  %v644_v32 = vpop.f32.mrf.mxu3  ;;  %v776_v3 = vsub.f32 %v1719_v4, %v696_v40  ;;  %v777_v54 = vsub.f32 %v1722_v5, %v696_v40  ;;  %v774_v5 = vsub.f32 %v1701_v48, %v693_v62  ;;  %v1848_v48 = vadd.f32 %v637_v60, %v1624_v7 }
 0x22f   : > { %v1821_v31 = vadd.f32 %v555_v37, %v1622_v6  ;;  %v1824_v55 = vadd.f32 %v644_v32, %v1624_v7  ;;  %v771_v60 = vsub.f32 %v1684_v39, %v1808_v52 }
 0x230   : > { %v868_v35 = vmul.f32 1.442695, %v776_v3  ;;  %v870_v22 = vmul.f32 1.442695, %v777_v54  ;;  %v775_v54 = vsub.f32 %v1704_v49, %v693_v62 }
 0x231   : > { %v739_v27 = vmax.f32 %v1821_v31, %v1824_v55 }
 0x232   : > { %1346 = vpow2.f32 %v868_v35 }
 0x233   : > { %740 = vmax.xlane.f32.xlu1 %v739_v27  ;;  %1348 = vpow2.f32 %v870_v22 }
 0x235   : > { %v699_v2 = vpop.xlane.xlu1 %698 }
 0x236   : > { %v778_v26 = vsub.f32 %v1729_v61, %v699_v2  ;;  %v779_v37 = vsub.f32 %v1732_v15, %v699_v2  ;;  %v558_v46 = vpop.f32.mrf.mxu2  ;;  %v647_v45 = vpop.f32.mrf.mxu3  ;;  %v772_v15 = vsub.f32 %v1693_v43, %v690_v21  ;;  %v773_v2 = vsub.f32 %v1696_v44, %v690_v21 }
 0x237   : > { %v1833_v32 = vadd.f32 %v558_v46, %v1622_v6  ;;  %v1836_v4 = vadd.f32 %v647_v45, %v1624_v7  ;;  %v864_v45 = vmul.f32 1.442695, %v774_v5  ;;  %v1845_v46 = vadd.f32 %v548_v9, %v1622_v6 }
 0x238   : > { %v872_v40 = vmul.f32 1.442695, %v778_v26  ;;  %v874_v3 = vmul.f32 1.442695, %v779_v37  ;;  %v866_v26 = vmul.f32 1.442695, %v775_v54  ;;  %v1347_v49 = vpop.eup %1346  ;;  %v770_v9 = vsub.f32 %v1681_v38, %v1808_v52 }
 0x239   : > { %v742_v61 = vmax.f32 %v1833_v32, %v1836_v4  ;;  %v860_v35 = vmul.f32 1.442695, %v772_v15  ;;  %v1349_v22 = vpop.eup %1348  ;;  %v862_v37 = vmul.f32 1.442695, %v773_v2  ;;  %v769_v38 = vsub.f32 %v1676_v34, %v1810_v51 }
 0x23a   : > { %1350 = vpow2.f32 %v872_v40  ;;  %v1870_v52 = vadd.f32 %v1596_v56, %v1622_v6  ;;  %v856_v39 = vmul.f32 1.442695, %v770_v9  ;;  %v1874_v2 = vadd.f32 %v1598_v57, %v1624_v7 }
 0x23b   : > { %1352 = vpow2.f32 %v874_v3  ;;  %743 = vmax.xlane.f32.xlu2 %v742_v61  ;;  %v730_v3 = vmax.f32 %v1845_v46, %v1848_v48  ;;  %v768_v61 = vsub.f32 %v1673_v33, %v1810_v51  ;;  %v858_v33 = vmul.f32 1.442695, %v771_v60 }
 0x23c   : > { %1354 = vpow2.f32 %v864_v45  ;;  %v1878_v45 = vadd.f32 %v1804_v25, %v1622_v6  ;;  %v1882_v51 = vadd.f32 %v1806_v30, %v1624_v7  ;;  %v652_v30 = vmax.f32 %v1870_v52, %v1874_v2 }
 0x23d   : > { %1356 = vpow2.f32 %v866_v26  ;;  %v852_v26 = vmul.f32 1.442695, %v768_v61 }
 0x23e   : > { %v560_v62 = vpop.f32.mrf.mxu2  ;;  %v649_v27 = vpop.f32.mrf.mxu3  ;;  %1358 = vpow2.f32 %v860_v35  ;;  %v854_v35 = vmul.f32 1.442695, %v769_v38  ;;  %v733_v25 = vmax.f32 %v1878_v45, %v1882_v51  ;;  %v763_v38 = vsub.f32 %v1644_v18, %v1798_v8 }
 0x23f   : > { %v1851_v43 = vadd.f32 %v560_v62, %v1622_v6  ;;  %v1854_v44 = vadd.f32 %v649_v27, %v1624_v7  ;;  %1360 = vpow2.f32 %v862_v37  ;;  %v766_v27 = vsub.f32 %v1661_v28, %v1802_v16 }
 0x240   : > { %v1351_v21 = vpop.eup %1350  ;;  %1362 = vpow2.f32 %v856_v39  ;;  %v1896_v28 = vadd.f32 %v1600_v58, %v1622_v6  ;;  %v760_v39 = vsub.f32 %v1627_v10, %v1796_v1  ;;  %v1928_v10 = vadd.f32 %v1782_v42, %v1624_v7 }
 0x241   : > { %v1353_v5 = vpop.eup %1352  ;;  %v745_v40 = vmax.f32 %v1851_v43, %v1854_v44  ;;  %v954_v54 = vpack.c.bf16 %v1351_v21, %v1347_v49  ;;  %v678_v49 = vpop.xlane.xlu0 %677  ;;  %1364 = vpow2.f32 %v858_v33 }
 0x242   : > { %v955_v15 = vpack.c.bf16 %v1353_v5, %v1349_v22  ;;  %v1355_v34 = vpop.eup %1354  ;;  %v767_v22 = vsub.f32 %v1664_v29, %v1802_v16  ;;  %v764_v37 = vsub.f32 %v1653_v23, %v678_v49  ;;  %1366 = vpow2.f32 %v852_v26  ;;  %v669_v26 = vpop.xlane.xlu1 %668 }
 0x243   : > { %746 = vmax.xlane.f32.xlu1 %v745_v40  ;;  %731 = vmax.xlane.f32.xlu2 %v730_v3  ;;  %v1357_v56 = vpop.eup %1356  ;;  %v765_v60 = vsub.f32 %v1656_v24, %v678_v49  ;;  %1368 = vpow2.f32 %v854_v35  ;;  %v848_v29 = vmul.f32 1.442695, %v766_v27  ;;  %v1900_v16 = vadd.f32 %v1602_v59, %v1624_v7 }
 0x244   : > { %975 = vmatpush.bf16.xpose.msrb.mxu0 %v954_v54  ;;  %993 = vmatpush.bf16.xpose.msrb.mxu1 %v955_v15  ;;  %v1359_v62 = vpop.eup %1358  ;;  %v850_v23 = vmul.f32 1.442695, %v767_v22  ;;  %v1904_v5 = vadd.f32 %v1788_v47, %v1622_v6  ;;  %v1908_v24 = vadd.f32 %v1790_v50, %v1624_v7  ;;  %v844_v3 = vmul.f32 1.442695, %v764_v37 }
 0x245   : > { %v1361_v57 = vpop.eup %1360  ;;  %v952_v21 = vpack.c.bf16 %v1355_v34, %v1359_v62  ;;  %v846_v54 = vmul.f32 1.442695, %v765_v60  ;;  %v762_v15 = vsub.f32 %v1641_v17, %v1798_v8  ;;  %1370 = vpow2.f32 %v848_v29  ;;  %v2168_v29 = vld [vmem:[#allocation19_spill] sm:$0xff] }
 0x246   : > { %v953_v9 = vpack.c.bf16 %v1357_v56, %v1361_v57  ;;  %v1363_v40 = vpop.eup %1362  ;;  %1372 = vpow2.f32 %v850_v23  ;;  %v655_v47 = vmax.f32 %v1896_v28, %v1900_v16  ;;  %v724_v50 = vmax.f32 %v1904_v5, %v1908_v24 }
 0x247   : > { %v1365_v58 = vpop.eup %1364  ;;  %1374 = vpow2.f32 %v844_v3  ;;  %v761_v17 = vsub.f32 %v1630_v11, %v1796_v1  ;;  %v840_v18 = vmul.f32 1.442695, %v762_v15  ;;  %v1924_v8 = vadd.f32 %v1780_v41, %v1622_v6  ;;  %v2169_v15 = vld [vmem:[#allocation8_spill] sm:$0xff] }
 0x248   : > { %v1367_v61 = vpop.eup %1366  ;;  %1376 = vpow2.f32 %v846_v54  ;;  %v842_v56 = vmul.f32 1.442695, %v763_v38  ;;  %v1932_v49 = vadd.f32 %v1792_v53, %v1622_v6  ;;  %v1936_v11 = vadd.f32 %v1794_v0, %v1624_v7  ;;  %v660_v54 = vpop.xlane.xlu2 %659  ;;  %v2170_v38 = vld [vmem:[#allocation9_spill] sm:$0xff] }
 0x249   : > { %v1369_v59 = vpop.eup %1368  ;;  %v950_v33 = vpack.c.bf16 %v1363_v40, %v1367_v61  ;;  %v836_v35 = vmul.f32 1.442695, %v760_v39  ;;  %v838_v41 = vmul.f32 1.442695, %v761_v17  ;;  %1378 = vpow2.f32 %v840_v18  ;;  %v2172_v18 = vld [vmem:[#allocation5_spill] sm:$0xff] }
 0x24a   : > { %v951_v34 = vpack.c.bf16 %v1365_v58, %v1369_v59  ;;  %v758_v57 = vsub.f32 %v1738_v19, %v669_v26  ;;  %1380 = vpow2.f32 %v842_v56  ;;  %v759_v42 = vsub.f32 %v1742_v20, %v669_v26  ;;  %v663_v23 = vpop.xlane.xlu1 %662 }
 0x24b   : > { %734 = vmax.xlane.f32.xlu1 %v733_v25  ;;  %653 = vmax.xlane.f32.xlu2 %v652_v30  ;;  %v1371_v1 = vpop.eup %1370  ;;  %v727_v53 = vmax.f32 %v1932_v49, %v1936_v11  ;;  %v718_v25 = vmax.f32 %v1924_v8, %v1928_v10  ;;  %1382 = vpow2.f32 %v836_v35  ;;  %v756_v0 = vsub.f32 %v1635_v13, %v1800_v12  ;;  %v2167_v13 = vld [vmem:[#allocation18_spill] sm:$0xff] }
 0x24c   : > { %976 = vmatpush.bf16.xpose.msrb.mxu0 %v952_v21  ;;  %994 = vmatpush.bf16.xpose.msrb.mxu1 %v953_v9  ;;  %v1373_v62 = vpop.eup %1372  ;;  %1384 = vpow2.f32 %v838_v41  ;;  %v757_v19 = vsub.f32 %v1638_v14, %v1800_v12  ;;  %v1950_v20 = vadd.f32 %v1772_v36, %v1622_v6  ;;  %v832_v21 = vmul.f32 1.442695, %v758_v57  ;;  %v2174_v41 = vld [vmem:[#allocation13_spill] sm:$0xff]  ;;  %v2175_v57 = vld [vmem:[#allocation16_spill] sm:$0xff] }
 0x24d   : > { %v1375_v27 = vpop.eup %1374  ;;  %v1954_v9 = vadd.f32 %v1774_v63, %v1624_v7  ;;  %v1958_v60 = vadd.f32 %v2167_v13, %v1622_v6  ;;  %v1962_v14 = vadd.f32 %v2168_v29, %v1624_v7  ;;  %v834_v12 = vmul.f32 1.442695, %v759_v42  ;;  %v2176_v42 = vld [vmem:[#allocation17_spill] sm:$0xff] }
 0x24e   : > { %v1377_v22 = vpop.eup %1376  ;;  %v948_v30 = vpack.c.bf16 %v1371_v1, %v1375_v27  ;;  %v828_v36 = vmul.f32 1.442695, %v756_v0  ;;  %v830_v58 = vmul.f32 1.442695, %v757_v19  ;;  %1386 = vpow2.f32 %v832_v21  ;;  %v2173_v1 = vld [vmem:[#allocation12_spill] sm:$0xff] }
 0x24f   : > { %v949_v37 = vpack.c.bf16 %v1373_v62, %v1377_v22  ;;  %v1379_v40 = vpop.eup %1378  ;;  %v754_v63 = vsub.f32 %v2169_v15, %v663_v23  ;;  %1388 = vpow2.f32 %v834_v12  ;;  %v712_v39 = vmax.f32 %v1950_v20, %v1954_v9 }
 0x250   : > { %v1381_v3 = vpop.eup %1380  ;;  %1390 = vpow2.f32 %v828_v36  ;;  %v753_v56 = vsub.f32 %v2172_v18, %v660_v54  ;;  %v1974_v35 = vadd.f32 %v2173_v1, %v1622_v6  ;;  %v1978_v27 = vadd.f32 %v2174_v41, %v1624_v7  ;;  %v2177_v36 = vld [vmem:[#allocation6_spill] sm:$0xff]  ;;  %v2182_v1 = vld [vmem:[#allocation11_spill] sm:$0xff] }
 0x251   : > { %v1383_v61 = vpop.eup %1382  ;;  %1392 = vpow2.f32 %v830_v58  ;;  %v824_v62 = vmul.f32 1.442695, %v754_v63  ;;  %v1982_v22 = vadd.f32 %v2175_v57, %v1622_v6  ;;  %v2178_v58 = vld [vmem:[#allocation7_spill] sm:$0xff]  ;;  %v2181_v18 = vld [vmem:[#allocation10_spill] sm:$0xff] }
 0x252   : > { %v1385_v59 = vpop.eup %1384  ;;  %v946_v17 = vpack.c.bf16 %v1379_v40, %v1383_v61  ;;  %v822_v19 = vmul.f32 1.442695, %v753_v56  ;;  %v706_v12 = vmax.f32 %v1974_v35, %v1978_v27  ;;  %v2179_v61 = vld [vmem:[#allocation14_spill] sm:$0xff]  ;;  %v2180_v63 = vld [vmem:[#allocation15_spill] sm:$0xff]  ;;  %v2014_v56 = vadd.f32 %v2181_v18, %v1622_v6 }
 0x253   : > { %656 = vmax.xlane.f32.xlu1 %v655_v47  ;;  %725 = vmax.xlane.f32.xlu2 %v724_v50  ;;  %v755_v47 = vsub.f32 %v2170_v38, %v663_v23  ;;  %v721_v50 = vmax.f32 %v1958_v60, %v1962_v14  ;;  %v947_v26 = vpack.c.bf16 %v1381_v3, %v1385_v59  ;;  %1394 = vpow2.f32 %v824_v62 }
 0x254   : > { %977 = vmatpush.bf16.xpose.msrb.mxu0 %v950_v33  ;;  %995 = vmatpush.bf16.xpose.msrb.mxu1 %v951_v34  ;;  %v2171_v33 = vld [vmem:[#allocation4_spill] sm:$0xff]  ;;  %v1387_v0 = vpop.eup %1386  ;;  %v1994_v3 = vadd.f32 %v2177_v36, %v1622_v6  ;;  %v2002_v15 = vadd.f32 %v2179_v61, %v1622_v6  ;;  %v2006_v59 = vadd.f32 %v2180_v63, %v1624_v7 }
 0x255   : > { %v752_v34 = vsub.f32 %v2171_v33, %v660_v54  ;;  %v1998_v54 = vadd.f32 %v2178_v58, %v1624_v7  ;;  %v2018_v62 = vadd.f32 %v2182_v1, %v1624_v7 }
 0x256   : > { %v709_v33 = vmax.f32 %v2002_v15, %v2006_v59 }
 0x257   : > { %v703_v41 = vmax.f32 %v2014_v56, %v2018_v62 }
 0x25b   : > { %728 = vmax.xlane.f32.xlu1 %v727_v53  ;;  %719 = vmax.xlane.f32.xlu2 %v718_v25  ;;  %v1986_v53 = vadd.f32 %v2176_v42, %v1624_v7  ;;  %v826_v25 = vmul.f32 1.442695, %v755_v47 }
 0x25c   : > { %978 = vmatpush.bf16.xpose.msrb.mxu0 %v948_v30  ;;  %996 = vmatpush.bf16.xpose.msrb.mxu1 %v949_v37  ;;  %v820_v30 = vmul.f32 1.442695, %v752_v34  ;;  %v1389_v37 = vpop.eup %1388  ;;  %v700_v34 = vmax.f32 %v1994_v3, %v1998_v54 }
 0x25d   : > { %v1391_v21 = vpop.eup %1390  ;;  %1396 = vpow2.f32 %v826_v25  ;;  %v715_v29 = vmax.f32 %v1982_v22, %v1986_v53 }
 0x25e   : > { %v1393_v13 = vpop.eup %1392  ;;  %1398 = vpow2.f32 %v820_v30  ;;  %v944_v23 = vpack.c.bf16 %v1387_v0, %v1391_v21 }
 0x25f   : > { %v945_v40 = vpack.c.bf16 %v1389_v37, %v1393_v13  ;;  %1400 = vpow2.f32 %v822_v19  ;;  %v1395_v38 = vpop.eup %1394 }
 0x263   : > { %722 = vmax.xlane.f32.xlu1 %v721_v50  ;;  %713 = vmax.xlane.f32.xlu2 %v712_v39  ;;  %v1397_v47 = vpop.eup %1396 }
 0x264   : > { %979 = vmatpush.bf16.xpose.msrb.mxu0 %v946_v17  ;;  %997 = vmatpush.bf16.xpose.msrb.mxu1 %v947_v26  ;;  %v1399_v50 = vpop.eup %1398 }
 0x265   : > { %v1401_v39 = vpop.eup %1400  ;;  %v942_v17 = vpack.c.bf16 %v1395_v38, %v1399_v50  ;;  %v2183_v50 = vld [vmem:[#allocation20_spill] sm:$0xff] }
 0x266   : > { %v943_v26 = vpack.c.bf16 %v1397_v47, %v1401_v39 }
 0x26b   : > { %716 = vmax.xlane.f32.xlu1 %v715_v29  ;;  %707 = vmax.xlane.f32.xlu2 %v706_v12 }
 0x26c   : > { %980 = vmatpush.bf16.xpose.msrb.mxu0 %v944_v23  ;;  %998 = vmatpush.bf16.xpose.msrb.mxu1 %v945_v40 }
 0x273   : > { %710 = vmax.xlane.f32.xlu1 %v709_v33  ;;  %701 = vmax.xlane.f32.xlu2 %v700_v34  ;;  %v2184_v34 = vld [vmem:[#allocation21_spill] sm:$0xff] }
 0x274   : > { %981 = vmatpush.bf16.xpose.msrb.mxu0 %v942_v17  ;;  %999 = vmatpush.bf16.xpose.msrb.mxu1 %v943_v26 }
 0x27b   : > { %704 = vmax.xlane.f32.xlu1 %v703_v41 }
 0x29e   : > { %v738_v57 = vpop.xlane.xlu2 %737 }
 0x29f   : > { %v804_v39 = vsub.f32 %v2183_v50, %v738_v57 }
 0x2a6   : > { %v741_v42 = vpop.xlane.xlu1 %740 }
 0x2a7   : > { %v807_v47 = vsub.f32 %v1824_v55, %v741_v42 }
 0x2a9   : > { %v930_v18 = vmul.f32 1.442695, %v807_v47 }
 0x2ae   : > { %v744_v25 = vpop.xlane.xlu2 %743 }
 0x2af   : > { %v808_v37 = vsub.f32 %v1833_v32, %v744_v25  ;;  %v809_v36 = vsub.f32 %v1836_v4, %v744_v25  ;;  %v924_v25 = vmul.f32 1.442695, %v804_v39 }
 0x2b1   : > { %v932_v29 = vmul.f32 1.442695, %v808_v37 }
 0x2b3   : > { %1402 = vpow2.f32 %v932_v29 }
 0x2b6   : > { %v747_v0 = vpop.xlane.xlu1 %746  ;;  %v2022_v30 = vpop.xlane.xlu2 %731 }
 0x2b7   : > { %v810_v6 = vsub.f32 %v1851_v43, %v747_v0  ;;  %v811_v13 = vsub.f32 %v1854_v44, %v747_v0  ;;  %v934_v44 = vmul.f32 1.442695, %v809_v36  ;;  %v800_v29 = vsub.f32 %v1845_v46, %v2022_v30 }
 0x2b9   : > { %v936_v23 = vmul.f32 1.442695, %v810_v6  ;;  %v938_v40 = vmul.f32 1.442695, %v811_v13  ;;  %v1403_v4 = vpop.eup %1402 }
 0x2bb   : > { %1404 = vpow2.f32 %v936_v23  ;;  %v801_v23 = vsub.f32 %v1848_v48, %v2022_v30  ;;  %v2185_v48 = vld [vmem:[#allocation2_spill] sm:$0xff] }
 0x2bc   : > { %1406 = vpow2.f32 %v938_v40 }
 0x2be   : > { %v735_v19 = vpop.xlane.xlu1 %734  ;;  %v654_v21 = vpop.xlane.xlu2 %653 }
 0x2bf   : > { %v748_v7 = vsub.f32 %v1870_v52, %v654_v21  ;;  %v749_v12 = vsub.f32 %v1874_v2, %v654_v21  ;;  %v806_v2 = vsub.f32 %v1821_v31, %v741_v42  ;;  %v802_v42 = vsub.f32 %v1878_v45, %v735_v19 }
 0x2c1   : > { %v812_v58 = vmul.f32 1.442695, %v748_v7  ;;  %v814_v61 = vmul.f32 1.442695, %v749_v12  ;;  %v1405_v33 = vpop.eup %1404  ;;  %v928_v17 = vmul.f32 1.442695, %v806_v2 }
 0x2c2   : > { %v970_v7 = vpack.c.bf16 %v1405_v33, %v1403_v4  ;;  %v920_v45 = vmul.f32 1.442695, %v802_v42 }
 0x2c3   : > { %1408 = vpow2.f32 %v812_v58  ;;  %v916_v58 = vmul.f32 1.442695, %v800_v29 }
 0x2c4   : > { %1410 = vpow2.f32 %v814_v61 }
 0x2c6   : > { %v657_v63 = vpop.xlane.xlu1 %656  ;;  %v726_v37 = vpop.xlane.xlu2 %725 }
 0x2c7   : > { %v750_v32 = vsub.f32 %v1896_v28, %v657_v63  ;;  %v751_v43 = vsub.f32 %v1900_v16, %v657_v63  ;;  %v805_v28 = vsub.f32 %v2184_v34, %v738_v57  ;;  %v1407_v16 = vpop.eup %1406  ;;  %v803_v57 = vsub.f32 %v1882_v51, %v735_v19 }
 0x2c8   : > { %v918_v19 = vmul.f32 1.442695, %v801_v23  ;;  %v797_v47 = vsub.f32 %v1908_v24, %v726_v37 }
 0x2c9   : > { %v816_v52 = vmul.f32 1.442695, %v750_v32  ;;  %v818_v38 = vmul.f32 1.442695, %v751_v43  ;;  %v1409_v26 = vpop.eup %1408  ;;  %v926_v0 = vmul.f32 1.442695, %v805_v28 }
 0x2ca   : > { %v1411_v41 = vpop.eup %1410  ;;  %v922_v40 = vmul.f32 1.442695, %v803_v57  ;;  %v910_v33 = vmul.f32 1.442695, %v797_v47  ;;  %v1486_v57 = vmov 1.0|1.0  }
 0x2cb   : > { %1412 = vpow2.f32 %v816_v52  ;;  %v796_v52 = vsub.f32 %v1904_v5, %v726_v37 }
 0x2cc   : > { %1414 = vpow2.f32 %v818_v38  ;;  %v2186_v38 = vld [vmem:[#allocation3_spill] sm:$0xff] }
 0x2cd   : > { %1416 = vpow2.f32 %v934_v44  ;;  %v908_v39 = vmul.f32 1.442695, %v796_v52 }
 0x2ce   : > { %v729_v1 = vpop.xlane.xlu1 %728  ;;  %1418 = vpow2.f32 %v928_v17  ;;  %v720_v44 = vpop.xlane.xlu2 %719 }
 0x2cf   : > { %1420 = vpow2.f32 %v930_v18  ;;  %v798_v46 = vsub.f32 %v1932_v49, %v729_v1  ;;  %v799_v43 = vsub.f32 %v1936_v11, %v729_v1  ;;  %v792_v24 = vsub.f32 %v1924_v8, %v720_v44 }
 0x2d0   : > { %1422 = vpow2.f32 %v924_v25  ;;  %v793_v1 = vsub.f32 %v1928_v10, %v720_v44 }
 0x2d1   : > { %v1413_v31 = vpop.eup %1412  ;;  %1424 = vpow2.f32 %v926_v0  ;;  %v912_v4 = vmul.f32 1.442695, %v798_v46  ;;  %v914_v49 = vmul.f32 1.442695, %v799_v43 }
 0x2d2   : > { %v1415_v55 = vpop.eup %1414  ;;  %v940_v21 = vpack.c.bf16 %v1413_v31, %v1409_v26  ;;  %1426 = vpow2.f32 %v920_v45 }
 0x2d3   : > { %v1417_v6 = vpop.eup %1416  ;;  %v941_v13 = vpack.c.bf16 %v1415_v55, %v1411_v41  ;;  %1428 = vpow2.f32 %v922_v40  ;;  %v902_v55 = vmul.f32 1.442695, %v793_v1 }
 0x2d4   : > { %982 = vmatpush.bf16.xpose.msrb.mxu0 %v940_v21  ;;  %v971_v12 = vpack.c.bf16 %v1407_v16, %v1417_v6  ;;  %v1419_v36 = vpop.eup %1418  ;;  %1430 = vpow2.f32 %v916_v58 }
 0x2d5   : > { %1000 = vmatpush.bf16.xpose.msrb.mxu1 %v941_v13  ;;  %v1421_v51 = vpop.eup %1420  ;;  %1432 = vpow2.f32 %v918_v19 }
 0x2d6   : > { %v723_v61 = vpop.xlane.xlu1 %722  ;;  %v1423_v63 = vpop.eup %1422  ;;  %1434 = vpow2.f32 %v912_v4 }
 0x2d7   : > { %v1425_v32 = vpop.eup %1424  ;;  %v968_v30 = vpack.c.bf16 %v1419_v36, %v1423_v63  ;;  %v794_v28 = vsub.f32 %v1958_v60, %v723_v61  ;;  %1436 = vpow2.f32 %v914_v49  ;;  %v795_v5 = vsub.f32 %v1962_v14, %v723_v61  ;;  %v714_v41 = vpop.xlane.xlu2 %713 }
 0x2d8   : > { %v969_v2 = vpack.c.bf16 %v1421_v51, %v1425_v32  ;;  %v1427_v50 = vpop.eup %1426  ;;  %1438 = vpow2.f32 %v908_v39  ;;  %v900_v60 = vmul.f32 1.442695, %v792_v24  ;;  %v788_v10 = vsub.f32 %v1950_v20, %v714_v41 }
 0x2d9   : > { %v1429_v11 = vpop.eup %1428  ;;  %1440 = vpow2.f32 %v910_v33  ;;  %v904_v25 = vmul.f32 1.442695, %v794_v28  ;;  %v906_v31 = vmul.f32 1.442695, %v795_v5 }
 0x2da   : > { %v1431_v34 = vpop.eup %1430  ;;  %v892_v45 = vmul.f32 1.442695, %v788_v10  ;;  %v267_v10 = vld [vmem:[%s2136_s3 + $0x8] sm:$0xff] }
 0x2db   : > { %983 = vmatmul.bf16.vlgmr.msrb.gmra.mxu0 %v2185_v48  ;;  %v1433_v16 = vpop.eup %1432  ;;  %v966_v26 = vpack.c.bf16 %v1427_v50, %v1431_v34  ;;  %1442 = vpow2.f32 %v904_v25 }
 0x2dc   : > { %1011 = vmatpush.bf16.xpose.msra.mxu0 %v970_v7  ;;  %1001 = vmatmul.bf16.vlgmr.msrb.gmra.mxu1 %v2186_v38  ;;  %v967_v18 = vpack.c.bf16 %v1429_v11, %v1433_v16  ;;  %v1435_v0 = vpop.eup %1434  ;;  %1444 = vpow2.f32 %v906_v31  ;;  %v789_v7 = vsub.f32 %v1954_v9, %v714_v41  ;;  %v278_v31 = vld [vmem:[%s2137_s4 + $0x8] sm:$0xff] }
 0x2dd   : > { %1029 = vmatpush.bf16.xpose.msra.mxu1 %v971_v12  ;;  %v1437_v37 = vpop.eup %1436  ;;  %1446 = vpow2.f32 %v900_v60  ;;  %v1487_v60 = vmov 0  }
 0x2de   : > { %v717_v17 = vpop.xlane.xlu1 %716  ;;  %v1439_v42 = vpop.eup %1438  ;;  %1448 = vpow2.f32 %v902_v55  ;;  %v894_v36 = vmul.f32 1.442695, %v789_v7  ;;  %1344 = vset.pattern.permute.xlu1 %v1487_v60  ;;  %1343 = vset.pattern.permute.xlu2 %v1487_v60 }
 0x2df   : > { %v790_v14 = vsub.f32 %v1982_v22, %v717_v17  ;;  %v1441_v21 = vpop.eup %1440  ;;  %v791_v8 = vsub.f32 %v1986_v53, %v717_v17  ;;  %v964_v6 = vpack.c.bf16 %v1435_v0, %v1439_v42  ;;  %v708_v23 = vpop.xlane.xlu2 %707  ;;  %1136 = vperm.xlu1 %1344, %v278_v31   ;;  %1345 = vset.pattern.permute.xlu0 %v1487_v60  ;;  %v1160_v60 = vld [vmem:[%s2106_s12 + $0x18] sm:$0xff] }
 0x2e0   : > { %v965_v13 = vpack.c.bf16 %v1437_v37, %v1441_v21  ;;  %v784_v9 = vsub.f32 %v1974_v35, %v708_v23  ;;  %v785_v46 = vsub.f32 %v1978_v27, %v708_v23  ;;  %v266_v21 = vld [vmem:[%s2136_s3] sm:$0xff]  ;;  %v280_v23 = vld [vmem:[%s2137_s4 + $0x18] sm:$0xff] }
 0x2e1   : > { %v896_v22 = vmul.f32 1.442695, %v790_v14  ;;  %v898_v12 = vmul.f32 1.442695, %v791_v8  ;;  %v1443_v53 = vpop.eup %1442 }
 0x2e2   : > { %v1445_v40 = vpop.eup %1444  ;;  %v884_v52 = vmul.f32 1.442695, %v784_v9 }
 0x2e3   : > { %v1447_v58 = vpop.eup %1446  ;;  %1450 = vpow2.f32 %v896_v22  ;;  %v279_v22 = vld [vmem:[%s2137_s4 + $0x10] sm:$0xff] }
 0x2e4   : > { %1012 = vmatpush.bf16.xpose.msra.mxu0 %v968_v30  ;;  %v1449_v51 = vpop.eup %1448  ;;  %1452 = vpow2.f32 %v898_v12  ;;  %v962_v61 = vpack.c.bf16 %v1443_v53, %v1447_v58  ;;  %v269_v12 = vld [vmem:[%s2136_s3 + $0x18] sm:$0xff] }
 0x2e5   : > { %1030 = vmatpush.bf16.xpose.msra.mxu1 %v969_v2  ;;  %1454 = vpow2.f32 %v892_v45  ;;  %v963_v63 = vpack.c.bf16 %v1445_v40, %v1449_v51  ;;  %v886_v2 = vmul.f32 1.442695, %v785_v46 }
 0x2e6   : > { %v711_v29 = vpop.xlane.xlu1 %710  ;;  %1456 = vpow2.f32 %v894_v36 }
 0x2e7   : > { %v786_v20 = vsub.f32 %v2002_v15, %v711_v29  ;;  %v787_v19 = vsub.f32 %v2006_v59, %v711_v29  ;;  %v702_v47 = vpop.xlane.xlu2 %701  ;;  %v268_v29 = vld [vmem:[%s2136_s3 + $0x10] sm:$0xff] }
 0x2e8   : > { %v780_v27 = vsub.f32 %v1994_v3, %v702_v47  ;;  %v781_v11 = vsub.f32 %v1998_v54, %v702_v47 }
 0x2e9   : > { %v888_v32 = vmul.f32 1.442695, %v786_v20  ;;  %v890_v43 = vmul.f32 1.442695, %v787_v19  ;;  %v1451_v30 = vpop.eup %1450 }
 0x2ea   : > { %v1453_v15 = vpop.eup %1452  ;;  %v876_v16 = vmul.f32 1.442695, %v780_v27 }
 0x2eb   : > { %988 = vmatmul.bf16.gmra.mxu0 %v1486_v57  ;;  %v1455_v4 = vpop.eup %1454  ;;  %1458 = vpow2.f32 %v888_v32 }
 0x2ec   : > { %1013 = vmatpush.bf16.xpose.msra.mxu0 %v966_v26  ;;  %1006 = vmatmul.bf16.gmra.mxu1 %v1486_v57  ;;  %v1457_v49 = vpop.eup %1456  ;;  %1460 = vpow2.f32 %v890_v43  ;;  %v960_v50 = vpack.c.bf16 %v1451_v30, %v1455_v4 }
 0x2ed   : > { %1031 = vmatpush.bf16.xpose.msra.mxu1 %v967_v18  ;;  %1462 = vpow2.f32 %v884_v52  ;;  %v961_v39 = vpack.c.bf16 %v1453_v15, %v1457_v49 }
 0x2ee   : > { %v705_v44 = vpop.xlane.xlu1 %704  ;;  %1464 = vpow2.f32 %v886_v2 }
 0x2ef   : > { %v782_v59 = vsub.f32 %v2014_v56, %v705_v44  ;;  %v783_v35 = vsub.f32 %v2018_v62, %v705_v44  ;;  %v878_v56 = vmul.f32 1.442695, %v781_v11  ;;  %v1157_v44 = vld [vmem:[%s2106_s12] sm:$0xff] }
 0x2f0   : > { %v1161_v11 = vld [vmem:[%s2106_s12 + $0x20] sm:$0xff] }
 0x2f1   : > { %v880_v33 = vmul.f32 1.442695, %v782_v59  ;;  %v882_v34 = vmul.f32 1.442695, %v783_v35  ;;  %v1459_v28 = vpop.eup %1458  ;;  %v1159_v59 = vld [vmem:[%s2106_s12 + $0x10] sm:$0xff] }
 0x2f2   : > { %v1461_v5 = vpop.eup %1460 }
 0x2f3   : > { %v1463_v17 = vpop.eup %1462  ;;  %1466 = vpow2.f32 %v880_v33 }
 0x2f4   : > { %1014 = vmatpush.bf16.xpose.msra.mxu0 %v964_v6  ;;  %v1465_v26 = vpop.eup %1464  ;;  %1468 = vpow2.f32 %v882_v34  ;;  %v958_v62 = vpack.c.bf16 %v1459_v28, %v1463_v17 }
 0x2f5   : > { %1032 = vmatpush.bf16.xpose.msra.mxu1 %v965_v13  ;;  %1470 = vpow2.f32 %v876_v16  ;;  %v959_v24 = vpack.c.bf16 %v1461_v5, %v1465_v26 }
 0x2f6   : > { %1472 = vpow2.f32 %v878_v56  ;;  %v1163_v56 = vld [vmem:[%s2106_s12 + $0x30] sm:$0xff] }
 0x2f9   : > { %v1467_v3 = vpop.eup %1466 }
 0x2fa   : > { %v1469_v54 = vpop.eup %1468 }
 0x2fb   : > { %v1471_v18 = vpop.eup %1470 }
 0x2fc   : > { %1015 = vmatpush.bf16.xpose.msra.mxu0 %v962_v61  ;;  %v1473_v1 = vpop.eup %1472  ;;  %v956_v41 = vpack.c.bf16 %v1467_v3, %v1471_v18 }
 0x2fd   : > { %1033 = vmatpush.bf16.xpose.msra.mxu1 %v963_v63  ;;  %v957_v25 = vpack.c.bf16 %v1469_v54, %v1473_v1  ;;  %v1158_v1 = vld [vmem:[%s2106_s12 + $0x8] sm:$0xff] }
 0x304   : > { %1016 = vmatpush.bf16.xpose.msra.mxu0 %v960_v50 }
 0x305   : > { %1034 = vmatpush.bf16.xpose.msra.mxu1 %v961_v39 }
 0x30c   : > { %1017 = vmatpush.bf16.xpose.msra.mxu0 %v958_v62 }
 0x30d   : > { %1035 = vmatpush.bf16.xpose.msra.mxu1 %v959_v24 }
 0x314   : > { %1018 = vmatpush.bf16.xpose.msra.mxu0 %v956_v41 }
 0x315   : > { %1036 = vmatpush.bf16.xpose.msra.mxu1 %v957_v25 }
 0x31b   : > { %1019 = vmatmul.bf16.vlgmr.msra.gmra.mxu0 %v2185_v48  ;;  %v277_v48 = vld [vmem:[%s2137_s4] sm:$0xff] }
 0x31c   : > { %1037 = vmatmul.bf16.vlgmr.msra.gmra.mxu1 %v2186_v38  ;;  %1131 = vperm.xlu2 %1343, %v277_v48  }
 0x324   : > { %1141 = vperm.xlu2 %1343, %v279_v22  }
 0x32b   : > { %1024 = vmatmul.bf16.gmra.mxu0 %v1486_v57 }
 0x32c   : > { %1042 = vmatmul.bf16.gmra.mxu1 %v1486_v57  ;;  %1146 = vperm.xlu2 %1343, %v280_v23  }
 0x351   : > { %v1137_v47 = vpop.permute.xlu1 %1136 }
 0x358   : > { %v984_v0 = vpop.f32.mrf.mxu0 }
 0x359   : > { %v1002_v37 = vpop.f32.mrf.mxu1 }
 0x35a   : > { %v1003_v14 = vadd.f32 %v1002_v37, %v984_v0 }
 0x360   : > { %v986_v38 = vpop.f32.mrf.mxu0 }
 0x361   : > { %v1004_v55 = vpop.f32.mrf.mxu1 }
 0x362   : > { %v1005_v42 = vadd.f32 %v1004_v55, %v986_v38 }
 0x364   : > { %1073 = vmatpush.msrb.mxu0 %v1005_v42  ;;  %v1162_v42 = vld [vmem:[%s2106_s12 + $0x28] sm:$0xff] }
 0x366   : > { %1074 = vmatpush.msrb.mxu0 %v1003_v14 }
 0x367   : > { %1319 = vmatmul.msk.f32.vlgmr.msrb.gmra.mxu0 %vm293_vm0, %v266_v21 }
 0x368   : > { %v989_v8 = vpop.f32.mrf.mxu0 }
 0x369   : > { %v1007_v6 = vpop.f32.mrf.mxu1 }
 0x36a   : > { %v1008_v57 = vadd.f32 %v1007_v6, %v989_v8 }
 0x36c   : > { %1474 = vrcp.f32 %v1008_v57  ;;  %v1164_v57 = vld [vmem:[%s2106_s12 + $0x38] sm:$0xff] }
 0x36f   : > { %1320 = vmatmul.msk.f32.gmra.mxu0 %vm293_vm0, %v267_v10 }
 0x370   : > { %v991_v13 = vpop.f32.mrf.mxu0 }
 0x371   : > { %v1009_v7 = vpop.f32.mrf.mxu1 }
 0x372   : > { %v1475_v61 = vpop.eup %1474 }
 0x373   : > { %v1119_v9 = vperm.slane %v1475_v61, 0 }
 0x376   : > { %v1132_v32 = vpop.permute.xlu2 %1131 }
 0x377   : > { %1321 = vmatmul.msk.f32.gmra.mxu0 %vm293_vm0, %v268_v29 }
 0x37e   : > { %v1142_v50 = vpop.permute.xlu2 %1141 }
 0x37f   : > { %1322 = vmatmul.msk.f32.gmra.mxu0 %vm293_vm0, %v269_v12 }
 0x386   : > { %v1147_v16 = vpop.permute.xlu2 %1146 }
 0x398   : > { %v1020_v53 = vpop.f32.mrf.mxu0 }
 0x399   : > { %v1038_v45 = vpop.f32.mrf.mxu1 }
 0x39a   : > { %v1039_v20 = vadd.f32 %v1038_v45, %v1020_v53 }
 0x3a0   : > { %v1022_v40 = vpop.f32.mrf.mxu0 }
 0x3a1   : > { %v1040_v36 = vpop.f32.mrf.mxu1 }
 0x3a2   : > { %v1041_v58 = vadd.f32 %v1040_v36, %v1022_v40 }
 0x3a4   : > { %1102 = vmatpush.msrb.mxu1 %v1041_v58 }
 0x3a6   : > { %1103 = vmatpush.msrb.mxu1 %v1039_v20 }
 0x3a7   : > { %1323 = vmatmul.msk.f32.vlgmr.msrb.gmra.mxu1 %vm293_vm0, %v266_v21 }
 0x3a8   : > { %v1025_v51 = vpop.f32.mrf.mxu0 }
 0x3a9   : > { %v1043_v63 = vpop.f32.mrf.mxu1 }
 0x3aa   : > { %v1044_v62 = vadd.f32 %v1043_v63, %v1025_v51 }
 0x3ac   : > { %1476 = vrcp.f32 %v1044_v62 }
 0x3af   : > { %1324 = vmatmul.msk.f32.gmra.mxu1 %vm293_vm0, %v267_v10 }
 0x3b0   : > { %v1027_v19 = vpop.f32.mrf.mxu0 }
 0x3b1   : > { %v1045_v15 = vpop.f32.mrf.mxu1 }
 0x3b2   : > { %v1477_v24 = vpop.eup %1476 }
 0x3b3   : > { %v1120_v3 = vperm.slane %v1477_v24, 0 }
 0x3b7   : > { %1325 = vmatmul.msk.f32.gmra.mxu1 %vm293_vm0, %v268_v29 }
 0x3bf   : > { %1326 = vmatmul.msk.f32.gmra.mxu1 %vm293_vm0, %v269_v12 }
 0x3e4   : > { %v1076_v46 = vpop.f32.mrf.mxu0 }
 0x3e5   : > { %v1121_v43 = vmul.f32 %v1119_v9, %v1076_v46 }
 0x3e7   : > { %v1149_v30 = vadd.f32 %v1132_v32, %v1121_v43 }
 0x3e9   : > { %v1165_v52 = vadd.f32 %v1157_v44, %v1149_v30 }
 0x3eb   : > { %1173 = vst [vmem:[%s2113_s15] sm:$0xff] %v1165_v52 }
 0x3ec   : > { %v1079_v2 = vpop.f32.mrf.mxu0 }
 0x3ed   : > { %v1123_v4 = vmul.f32 %v1119_v9, %v1079_v2 }
 0x3ef   : > { %v1151_v49 = vadd.f32 %v1137_v47, %v1123_v4 }
 0x3f1   : > { %v1167_v35 = vadd.f32 %v1159_v59, %v1151_v49 }
 0x3f3   : > { %1175 = vst [vmem:[%s2113_s15 + $0x10] sm:$0xff] %v1167_v35 }
 0x3f4   : > { %v1082_v27 = vpop.f32.mrf.mxu0 }
 0x3f5   : > { %v1125_v39 = vmul.f32 %v1119_v9, %v1082_v27 }
 0x3f7   : > { %v1153_v33 = vadd.f32 %v1142_v50, %v1125_v39 }
 0x3f9   : > { %v1169_v34 = vadd.f32 %v1161_v11, %v1153_v33 }
 0x3fb   : > { %1177 = vst [vmem:[%s2113_s15 + $0x20] sm:$0xff] %v1169_v34 }
 0x3fc   : > { %v1085_v28 = vpop.f32.mrf.mxu0 }
 0x3fd   : > { %v1127_v5 = vmul.f32 %v1119_v9, %v1085_v28 }
 0x3ff   : > { %v1155_v17 = vadd.f32 %v1147_v16, %v1127_v5 }
 0x401   : > { %v1171_v26 = vadd.f32 %v1163_v56, %v1155_v17 }
 0x403   : > { %1179 = vst [vmem:[%s2113_s15 + $0x30] sm:$0xff] %v1171_v26 }
 0x424   : > { %v1105_v54 = vpop.f32.mrf.mxu1 }
 0x425   : > { %v1122_v18 = vmul.f32 %v1120_v3, %v1105_v54 }
 0x427   : > { %v1150_v41 = vadd.f32 %v1132_v32, %v1122_v18 }
 0x429   : > { %v1166_v25 = vadd.f32 %v1158_v1, %v1150_v41 }
 0x42b   : > { %1174 = vst [vmem:[%s2113_s15 + $0x8] sm:$0xff] %v1166_v25 }
 0x42c   : > { %v1108_v31 = vpop.f32.mrf.mxu1 }
 0x42d   : > { %v1124_v0 = vmul.f32 %v1120_v3, %v1108_v31 }
 0x42f   : > { %v1152_v37 = vadd.f32 %v1137_v47, %v1124_v0 }
 0x431   : > { %v1168_v48 = vadd.f32 %v1160_v60, %v1152_v37 }
 0x433   : > { %1176 = vst [vmem:[%s2113_s15 + $0x18] sm:$0xff] %v1168_v48 }
 0x434   : > { %v1111_v38 = vpop.f32.mrf.mxu1 }
 0x435   : > { %v1126_v55 = vmul.f32 %v1120_v3, %v1111_v38 }
 0x437   : > { %v1154_v14 = vadd.f32 %v1142_v50, %v1126_v55 }
 0x439   : > { %v1170_v21 = vadd.f32 %v1162_v42, %v1154_v14 }
 0x43b   : > { %1178 = vst [vmem:[%s2113_s15 + $0x28] sm:$0xff] %v1170_v21 }
 0x43c   : > { %v1114_v8 = vpop.f32.mrf.mxu1 }
 0x43d   : > { %v1128_v6 = vmul.f32 %v1120_v3, %v1114_v8 }
 0x43f   : > { %v1156_v10 = vadd.f32 %v1147_v16, %v1128_v6 }
 0x441   : > { %v1172_v13 = vadd.f32 %v1164_v57, %v1156_v10 }
 0x443   : > { %1180 = vst [vmem:[%s2113_s15 + $0x38] sm:$0xff] %v1172_v13 }
 0x444 PF: > { %s15_s18 = sadd.s32 1, %s1484_s18  }
 0x445   : > { %p12_p4 = scmp.ge.s32.totalorder %s15_s18, 4  }
 0x447   :  { %14 = sbr.rel (!%p12_p4) target bundleno = 1 (0x1), region = 76 }

</bundles_post_ra>
